<compile_context>
chip_gen: v7x
topology: tpu7x:2x2x1
jax: 0.10.0
libtpu: 0.0.40
codegen_flags: <defaults>
</compile_context>

<pallas_src>
import functools

import jax
import jax.numpy as jnp
from jax.experimental import pallas as pl
from jax.experimental.pallas import tpu as pltpu


# Per generation: (target bytes per pipelined buffer, scoped-VMEM budget we
# request via vmem_limit_bytes).  v7x only has 64 MiB physical VMEM so its
# budget stays well under that; v5e's scoped default is 16 MiB so we request an
# explicit (still modest) limit instead of relying on the default.
_GEN_PARAMS = {
    "v7x": (6 << 20, 44 << 20),
    "v6e": (4 << 20, 48 << 20),
    "v5p": (2 << 20, 32 << 20),
    "v5e": (2 << 20, 24 << 20),
    "unknown": (2 << 20, 24 << 20),
}

_MIN_PIPELINE_BYTES = 4 << 20  # above this, insist on >=4 grid steps


def _round_up(n: int, m: int) -> int:
    return ((n + m - 1) // m) * m


def _sublane_multiple(itemsize: int) -> int:
    # Sub-32-bit dtypes pack along sublanes: f32 -> 8, bf16 -> 16, int8 -> 32.
    return {4: 8, 2: 16, 1: 32}.get(itemsize, 8)


def _tpu_generation() -> str:
    try:
        kind = jax.devices()[0].device_kind.lower()
    except Exception:
        return "unknown"
    if "v7" in kind or "7x" in kind:
        return "v7x"
    if "v6" in kind:
        return "v6e"
    if "v5p" in kind:
        return "v5p"
    if "v5" in kind:
        return "v5e"
    return "unknown"


# --------------------------------------------------------------------------- #
# Kernel body
# --------------------------------------------------------------------------- #
def _normalize_kernel(x_ref, o_ref, *, power: float, axis: int):
    x = x_ref[...]
    xf = x.astype(jnp.float32)  # accumulate the p-sum in f32

    if power == 2.0:
        s = jnp.sum(xf * xf, axis=axis, keepdims=True)
        inv = jax.lax.rsqrt(s)
    elif power == 1.0:
        # torch semantics: x.pow(1).sum(...) == plain sum (no abs); a zero or
        # negative sum gives inf/NaN exactly like the reference module.
        s = jnp.sum(xf, axis=axis, keepdims=True)
        inv = pl.reciprocal(s, approx=True)  # EUP slot; free in a DMA-bound kernel
    elif float(power).is_integer() and power > 0:
        p = int(power)
        s = jnp.sum(jax.lax.integer_pow(xf, p), axis=axis, keepdims=True)
        if p & (p - 1) == 0:
            # p == 2**m: (m-1) sqrts followed by one rsqrt -> no VPU divide.
            y = s
            k = p
            while k > 2:
                y = jnp.sqrt(y)
                k >>= 1
            inv = jax.lax.rsqrt(y)
        else:
            inv = jnp.power(s, -1.0 / p)
    else:
        # TODO(synk): general non-integer power uses jnp.power (EUP log/exp),
        # matching torch's x.pow(p) semantics on possibly-negative values.
        s = jnp.sum(jnp.power(xf, power), axis=axis, keepdims=True)
        inv = jnp.power(s, -1.0 / power)

    # Scale in f32 and cast exactly once at the store (HBM-bound; VALU has slack).
    o_ref[...] = (xf * inv).astype(o_ref.dtype)


# --------------------------------------------------------------------------- #
# VMEM footprint estimates (padded layouts + f32 upcast temporaries)
# --------------------------------------------------------------------------- #
def _vmem_footprint_3d(tB, C, tHW, dtype):
    """Returns (estimated total kernel VMEM bytes, padded bytes of one block)."""
    itemsize = jnp.dtype(dtype).itemsize
    pc = _round_up(C, _sublane_multiple(itemsize))   # sublane padding of C
    pw = _round_up(max(tHW, 1), 128)                 # lane padding of tHW
    native_block = tB * pc * pw * itemsize
    f32_block = tB * _round_up(C, 8) * pw * 4
    n_tmp = 1 if itemsize >= 4 else 2                # xf (upcast) and xf*xf temps
    total = 4 * native_block + n_tmp * f32_block     # in+out, double-buffered
    return total, native_block


def _choose_tiles_3d(B, C, HW, dtype, gen):
    buf_target, vmem_budget = _GEN_PARAMS[gen]
    itemsize = jnp.dtype(dtype).itemsize
    # >=2 KiB of contiguous data per strided-DMA row (512 f32 / 1024 bf16 elems).
    min_thw = min(HW, max(128, _round_up(2048 // itemsize, 128)))

    total1, block1 = _vmem_footprint_3d(1, C, HW, dtype)
    if block1 <= buf_target and total1 <= vmem_budget:
        # Whole spatial extent fits one buffer; fold batch rows into the block.
        tHW = HW
        tB = max(1, min(B, buf_target // max(block1, 1),
                        vmem_budget // max(total1, 1)))
    else:
        # Tile the lane (HW) axis; block width is a multiple of 128.
        tB = 1
        pc = _round_up(C, _sublane_multiple(itemsize))
        n_tmp = 1 if itemsize >= 4 else 2
        per_lane_total = 4 * pc * itemsize + n_tmp * _round_up(C, 8) * 4
        pw_from_block = (buf_target // max(pc * itemsize, 1)) // 128 * 128
        pw_from_total = (vmem_budget // max(per_lane_total, 1)) // 128 * 128
        tHW = max(128, min(pw_from_block, pw_from_total))
        tHW = max(tHW, min_thw)
        if tHW >= HW:
            tHW = HW

    total_bytes = B * C * HW * itemsize
    if total_bytes > _MIN_PIPELINE_BYTES:
        # >=4 grid steps so the software pipeline actually overlaps DMA/compute.
        while tB > 1 and pl.cdiv(B, tB) * pl.cdiv(HW, tHW) < 4:
            tB = max(1, tB // 2)
        while pl.cdiv(B, tB) * pl.cdiv(HW, tHW) < 4 and tHW > min_thw:
            new = max(min_thw, _round_up(tHW // 2, 128))
            if new >= tHW:
                break
            tHW = new

    # v7x: both TensorCores should get at least one "parallel" block.
    if gen == "v7x" and total_bytes > (1 << 20):
        if pl.cdiv(B, tB) * pl.cdiv(HW, tHW) < 2:
            if tB > 1:
                tB = max(1, (tB + 1) // 2)
            elif HW >= 256:
                tHW = max(128, _round_up(HW // 2, 128))
    return tB, tHW


def _choose_rows_2d(B, C, dtype, gen):
    buf_target, vmem_budget = _GEN_PARAMS[gen]
    itemsize = jnp.dtype(dtype).itemsize
    sub = _sublane_multiple(itemsize)
    pc = _round_up(C, 128)  # lane padding: real VMEM = (128/C)x nominal for small C
    n_tmp = 1 if itemsize >= 4 else 2
    per_row_total = 4 * pc * itemsize + n_tmp * pc * 4
    rows = min(buf_target // max(pc * itemsize, 1),
               vmem_budget // max(per_row_total, 1))
    tB = min(B, max(sub, (rows // sub) * sub))

    total_bytes = B * C * itemsize
    if total_bytes > _MIN_PIPELINE_BYTES:
        while tB > sub and pl.cdiv(B, tB) < 4:
            tB = max(sub, ((tB // 2) // sub) * sub)
    if gen == "v7x" and total_bytes > (1 << 20) and pl.cdiv(B, tB) < 2 and tB > sub:
        tB = max(sub, (((tB + 1) // 2) // sub) * sub)
    return tB


# --------------------------------------------------------------------------- #
# pallas_call wrappers
# --------------------------------------------------------------------------- #
def _normalize_2d(x, power, gen):
    B, C = x.shape
    tB = _choose_rows_2d(B, C, x.dtype, gen)
    _, vmem_budget = _GEN_PARAMS[gen]
    kernel = functools.partial(_normalize_kernel, power=power, axis=-1)
    return pl.pallas_call(
        kernel,
        out_shape=jax.ShapeDtypeStruct((B, C), x.dtype),
        grid_spec=pltpu.PrefetchScalarGridSpec(
            num_scalar_prefetch=0,
            grid=(pl.cdiv(B, tB),),
            in_specs=[pl.BlockSpec((tB, C), lambda i: (i, 0))],
            out_specs=pl.BlockSpec((tB, C), lambda i: (i, 0)),
        ),
        compiler_params=pltpu.CompilerParams(
            dimension_semantics=("parallel",),
            vmem_limit_bytes=vmem_budget),
    )(x)


def _normalize_3d(x3, power, gen):
    B, C, HW = x3.shape
    tB, tHW = _choose_tiles_3d(B, C, HW, x3.dtype, gen)
    _, vmem_budget = _GEN_PARAMS[gen]
    kernel = functools.partial(_normalize_kernel, power=power, axis=1)
    return pl.pallas_call(
        kernel,
        out_shape=jax.ShapeDtypeStruct((B, C, HW), x3.dtype),
        grid_spec=pltpu.PrefetchScalarGridSpec(
            num_scalar_prefetch=0,
            grid=(pl.cdiv(B, tB), pl.cdiv(HW, tHW)),
            in_specs=[pl.BlockSpec((tB, C, tHW), lambda b, t: (b, 0, t))],
            out_specs=pl.BlockSpec((tB, C, tHW), lambda b, t: (b, 0, t)),
        ),
        compiler_params=pltpu.CompilerParams(
            dimension_semantics=("parallel", "parallel"),
            vmem_limit_bytes=vmem_budget),
    )(x3)


def normalize(x: jax.Array, power: float = 2.0) -> jax.Array:
    """Equivalent of Normalize(power).forward(x): L-p normalize over dim 1."""
    power = float(power)
    gen = _tpu_generation()
    if x.ndim == 2:
        return _normalize_2d(x, power, gen)

    orig_shape = x.shape
    B, C = x.shape[0], x.shape[1]
    HW = 1
    for d in x.shape[2:]:
        HW *= d
    if HW == 1:
        # Degenerate spatial extent: use the lane-dense (B, C) layout instead of
        # a 1-lane-wide block (avoids masked vst on every store).
        return _normalize_2d(x.reshape(B, C), power, gen).reshape(orig_shape)
    out = _normalize_3d(x.reshape(B, C, HW), power, gen)
    return out.reshape(orig_shape)


if __name__ == "__main__":
    key = jax.random.PRNGKey(0)
    k0, k1, k2 = jax.random.split(key, 3)

    # NCHW input, power=2 (module default).
    B, C, H, W = 2, 4, 16, 16
    x = jax.random.normal(k0, (B, C, H, W), dtype=jnp.float32)
    out = jax.block_until_ready(normalize(x, power=2.0))
    ref = x / jnp.power(jnp.sum(jnp.power(x, 2.0), axis=1, keepdims=True), 0.5)
    assert out.shape == x.shape and out.dtype == x.dtype
    assert jnp.allclose(out, ref, atol=1e-5, rtol=1e-5)

    # 2-D (B, C) input (lane-dense path).
    x2 = jax.random.normal(k1, (8, 32), dtype=jnp.float32)
    out2 = jax.block_until_ready(normalize(x2, power=2.0))
    ref2 = x2 / jnp.power(jnp.sum(jnp.power(x2, 2.0), axis=1, keepdims=True), 0.5)
    assert out2.shape == x2.shape and out2.dtype == x2.dtype
    assert jnp.allclose(out2, ref2, atol=1e-5, rtol=1e-5)

    # Even-integer power path (power=4 -> 1 sqrt + rsqrt); positive inputs keep
    # the norm well-conditioned.
    x4 = jnp.abs(jax.random.normal(k2, (B, C, H, W), dtype=jnp.float32)) + 0.5
    out4 = jax.block_until_ready(normalize(x4, power=4.0))
    ref4 = x4 / jnp.power(jnp.sum(jnp.power(x4, 4.0), axis=1, keepdims=True), 0.25)
    assert jnp.allclose(out4, ref4, atol=1e-4, rtol=1e-4)

    print("KERNEL_OK")
</pallas_src>

<mosaic_0001>
module attributes {stable_mosaic.version = 11 : i64} {
  func.func @_normalize_kernel(%arg0: i32, %arg1: i32, %arg2: memref<2x4x256xf32, #tpu.memory_space<vmem>>, %arg3: memref<2x4x256xf32, #tpu.memory_space<vmem>>) attributes {dimension_semantics = [#tpu.dimension_semantics<parallel>, #tpu.dimension_semantics<parallel>], iteration_bounds = array<i64: 1, 1>, scalar_prefetch = 0 : i64, scratch_operands = 0 : i64, tpu.core_type = #tpu.core_type<tc>, window_params = [{transform_indices = @transform_0, window_bounds = array<i64: 2, 4, 256>}, {transform_indices = @transform_1, window_bounds = array<i64: 2, 4, 256>}]} {
    %c0 = arith.constant 0 : index
    %c0_0 = arith.constant 0 : index
    %c0_1 = arith.constant 0 : index
    %0 = vector.load %arg2[%c0, %c0_0, %c0_1] : memref<2x4x256xf32, #tpu.memory_space<vmem>>, vector<2x4x256xf32>
    %1 = arith.mulf %0, %0 : vector<2x4x256xf32>
    %cst = arith.constant dense<0.000000e+00> : vector<2x256xf32>
    %2 = vector.multi_reduction <add>, %1, %cst [1] : vector<2x4x256xf32> to vector<2x256xf32>
    %3 = vector.shape_cast %2 : vector<2x256xf32> to vector<2x1x256xf32>
    %4 = math.rsqrt %3 : vector<2x1x256xf32>
    %5 = vector.broadcast %4 : vector<2x1x256xf32> to vector<2x4x256xf32>
    %6 = arith.mulf %0, %5 : vector<2x4x256xf32>
    %c0_2 = arith.constant 0 : index
    %c0_3 = arith.constant 0 : index
    %c0_4 = arith.constant 0 : index
    %7 = vector.load %arg3[%c0_2, %c0_3, %c0_4] : memref<2x4x256xf32, #tpu.memory_space<vmem>>, vector<2x4x256xf32>
    tpu.vector_store %arg3[%c0_2, %c0_3, %c0_4], %6 {strides = array<i32>} : memref<2x4x256xf32, #tpu.memory_space<vmem>>, vector<2x4x256xf32>,
    return
  }
  func.func @transform_0(%arg0: i32, %arg1: i32) -> (i32, i32, i32) {
    %c0_i32 = arith.constant 0 : i32
    %c0_i32_0 = arith.constant 0 : i32
    return %arg0, %c0_i32, %arg1 : i32, i32, i32
  }
  func.func @transform_1(%arg0: i32, %arg1: i32) -> (i32, i32, i32) {
    %c0_i32 = arith.constant 0 : i32
    %c0_i32_0 = arith.constant 0 : i32
    return %arg0, %c0_i32, %arg1 : i32, i32, i32
  }
}

</mosaic_0001>

<bundles_post_ra>
// kernel: tpu_custom_call.1
= control target key start
LH: loop header
LB: loop body
LE: loop exit
PB: predicated region body
PF: predicated region fallthrough
CT: control target
= control target key end

     0   :  { %6 = vsyncpa [#allocation3], 0  ;;  %s199_s0 = inlined_call_operand.hbm [shape: f32[2,4,256], index: 0, kind: input, shape index: {}]   ;;  %s200_s1 = inlined_call_operand.hbm [shape: f32[2,4,256], index: 1, kind: output, shape index: {}]  }
   0x1   :  { %7 = vsyncpa [#allocation4], 0  ;;  %s155_s6 = smov [#allocation2]   ;;  %s107_s10 = scalar_lea.hbm %s199_s0, 256 }
   0x2   :  { %s13_s7 = sshll.u32 %s155_s6, 4  ;;  %p108_p0 = scmp.ne.s32.totalorder %s199_s0, %s107_s10  ;;  %s14_s7 = int_to_ptr.vmem [resolvable:$true] %s13_s7 }
   0x3   :  { %p111_p1 = scmp.lt.u32.totalorder %s107_s10, %s199_s0 }
   0x5   :  { %p113_p2 = pnand %p111_p1, %p108_p0 }
   0x7   :  { %116 = shalt.err (!%p113_p2)
}
   0x8   :  { %s117_s15 = scalar_lea.vmem %s14_s7, 256  ;;  %p122_p4 = scmp.lt.s32.totalorder %s14_s7, %s14_s7 }
   0x9   :  { %p118_p3 = scmp.ne.s32.totalorder %s14_s7, %s117_s15  ;;  %p123_p5 = scmp.lt.s32.totalorder %s117_s15, %s117_s15 }
   0xb   :  { %p124_p6 = por %p123_p5, %p122_p4 }
   0xd   :  { %p125_p7 = pnand %p124_p6, %p118_p3 }
   0xf   :  { %128 = shalt.err (!%p125_p7)
}
  0x10   :  { %s156_s16 = smov 128   ;;  %s157_s17 = smov 8  }
  0x11   :  { %19 = dma.hbm_to_vmem [thread:$0]  %s199_s0, 256, %s14_s7, [#allocation3], %s156_s16, %s156_s16, %s157_s17  }
  0x12   :  { %151 = dma.done.wait [#allocation3], 256  }
  0x13   :  { %152 = vsyncadd [#allocation3], 4294967040  ;;  %v23_v0 = vld [vmem:[#allocation2] sm:$0xff]  ;;  %vm33_vm0 = vcmask 1043456   ;;  %v24_v1 = vld [vmem:[#allocation2 + $0x8] sm:$0xff]  ;;  %s158_s0 = smov [#allocation5]  }
  0x14   :  { %v25_v2 = vmul.f32 %v23_v0, %v23_v0  ;;  %v26_v3 = vmul.f32 %v24_v1, %v24_v1  ;;  %s83_s20 = sshll.u32 %s158_s0, 4  ;;  %s84_s20 = int_to_ptr.vmem [resolvable:$true] %s83_s20 }
  0x15   :  { %s129_s21 = scalar_lea.vmem %s84_s20, 256  ;;  %p134_p9 = scmp.lt.s32.totalorder %s84_s20, %s84_s20 }
  0x16   :  { %v29_v4 = vcombine.high %v25_v2, %v25_v2  ;;  %v34_v5 = vsel %vm33_vm0, %v25_v2, 0.0  ;;  %v30_v6 = vcombine.high %v26_v3, %v26_v3  ;;  %v48_v7 = vsel %vm33_vm0, %v26_v3, 0.0  ;;  %p130_p8 = scmp.ne.s32.totalorder %s84_s20, %s129_s21  ;;  %p135_p10 = scmp.lt.s32.totalorder %s129_s21, %s129_s21 }
  0x17   :  { %v35_v8 = vrot.slane %v34_v5, 4  ;;  %v49_v9 = vrot.slane %v48_v7, 4 }
  0x18   :  { %v41_v10 = vsel %vm33_vm0, %v29_v4, 0.0  ;;  %v55_v11 = vsel %vm33_vm0, %v30_v6, 0.0  ;;  %p136_p11 = por %p135_p10, %p134_p9 }
  0x19   :  { %v36_v12 = vadd.f32 %v35_v8, %v34_v5  ;;  %v42_v13 = vrot.slane %v41_v10, 4  ;;  %v50_v14 = vadd.f32 %v49_v9, %v48_v7  ;;  %v56_v15 = vrot.slane %v55_v11, 4 }
  0x1a   :  { %p137_p12 = pnand %p136_p11, %p130_p8 }
  0x1b   :  { %v37_v16 = vrot.slane %v36_v12, 2  ;;  %v43_v17 = vadd.f32 %v42_v13, %v41_v10  ;;  %v51_v18 = vrot.slane %v50_v14, 2  ;;  %v57_v19 = vadd.f32 %v56_v15, %v55_v11 }
  0x1d   :  { %v38_v20 = vadd.f32 %v37_v16, %v36_v12  ;;  %v44_v21 = vrot.slane %v43_v17, 2  ;;  %v52_v22 = vadd.f32 %v51_v18, %v50_v14  ;;  %v58_v23 = vrot.slane %v57_v19, 2 }
  0x1f   :  { %v39_v24 = vrot.slane %v38_v20, 1  ;;  %v45_v25 = vadd.f32 %v44_v21, %v43_v17  ;;  %v53_v26 = vrot.slane %v52_v22, 1  ;;  %v59_v27 = vadd.f32 %v58_v23, %v57_v19 }
  0x21   :  { %v40_v28 = vadd.f32 %v39_v24, %v38_v20  ;;  %v46_v29 = vrot.slane %v45_v25, 1  ;;  %v54_v30 = vadd.f32 %v53_v26, %v52_v22  ;;  %v60_v31 = vrot.slane %v59_v27, 1 }
  0x23   :  { %v47_v32 = vadd.f32 %v46_v29, %v45_v25  ;;  %99 = vrsqrt.f32 %v40_v28  ;;  %v61_v33 = vadd.f32 %v60_v31, %v59_v27 }
  0x24   :  { %101 = vrsqrt.f32 %v54_v30 }
  0x25   :  { %103 = vrsqrt.f32 %v47_v32 }
  0x26   :  { %105 = vrsqrt.f32 %v61_v33 }
  0x2d   :  { %v100_v34 = vpop.eup %99 }
  0x2e   :  { %v102_v35 = vpop.eup %101 }
  0x2f   :  { %v104_v36 = vpop.eup %103 }
  0x30   :  { %v106_v37 = vpop.eup %105  ;;  %v70_v38 = vcombine.low %v100_v34, %v104_v36 }
  0x31   :  { %v71_v39 = vcombine.low %v102_v35, %v106_v37 }
  0x32   :  { %v74_v40 = vmul.f32 %v70_v38, %v23_v0 }
  0x33   :  { %v75_v41 = vmul.f32 %v71_v39, %v24_v1 }
  0x34   :  { %76 = vst [vmem:[#allocation5] sm:$0xff] %v74_v40 }
  0x35   :  { %77 = vst [vmem:[#allocation5 + $0x8] sm:$0xff] %v75_v41 }
  0x36   :  { %140 = shalt.err (!%p137_p12)
}
  0x37   :  { %s141_s24 = scalar_lea.hbm %s200_s1, 256 }
  0x38   :  { %p142_p13 = scmp.ne.s32.totalorder %s200_s1, %s141_s24  ;;  %p145_p0 = scmp.lt.u32.totalorder %s141_s24, %s200_s1 }
  0x3a   :  { %p147_p1 = pnand %p145_p0, %p142_p13 }
  0x3c   :  { %150 = shalt.err (!%p147_p1)
}
  0x3d   :  { %89 = dma.vmem_to_hbm [thread:$0]  %s84_s20, 256, %s200_s1, [#allocation4], %s156_s16, %s156_s16, %s157_s17  }
  0x3e   :  { %153 = dma.done.wait [#allocation4], 256  }
  0x3f   :  { %154 = vsyncadd [#allocation4], 4294967040 }
  0x40   :  { %93 = vsyncpa [#allocation3], 1 }
  0x41   :  { %94 = vsyncpa [#allocation4], 1 }

</bundles_post_ra>
